<compile_context>
chip_gen: v6e
topology: v6e:2x2x1
jax: 0.10.0
libtpu: 0.0.40
codegen_flags: <defaults>
</compile_context>

<pallas_src>
import functools

import jax
import jax.numpy as jnp
from jax.experimental import pallas as pl
from jax.experimental.pallas import tpu as pltpu


def _leaky_relu(x, slope=0.2):
    return jnp.where(x > 0, x, slope * x)


def _wn_effective_weight(v, g):
    # PyTorch weight_norm over all dims except dim 0 (output channels).
    # v: (C_out, C_in, K), g: (C_out,)
    norm = jnp.sqrt(jnp.sum(v * v, axis=(1, 2), keepdims=True))
    return v * (g[:, None, None] / norm)


def prepare_weights(params, compute_dtype=None):
    """Fold weight-norm + matmul layout once per parameter set."""
    C = params["b3"].shape[0]
    w3 = _wn_effective_weight(params["v3"], params["g3"])    # (C, C, 3)
    w1 = _wn_effective_weight(params["v1"], params["g1"])    # (C, C, 1)
    ws = _wn_effective_weight(params["vs"], params["gs"])    # (C, C, 1)

    w3_mm = jnp.transpose(w3, (2, 1, 0))                     # (3, C_in, C_out)
    w1_mm = w1[:, :, 0].T                                    # (C_in, C_out)
    ws_mm = ws[:, :, 0].T
    if compute_dtype is not None:
        w3_mm = w3_mm.astype(compute_dtype)
        w1_mm = w1_mm.astype(compute_dtype)
        ws_mm = ws_mm.astype(compute_dtype)

    prep = {
        "w3": w3_mm, "w1": w1_mm, "ws": ws_mm,
        "b3": params["b3"].reshape(1, C).astype(jnp.float32),
        "bt": (params["b1"] + params["bs"]).reshape(1, C).astype(jnp.float32),
        "wt": None,
    }
    # Fused tail only pays when 2C == 256 fills the MXU K depth (C == 128).
    if C == 128:
        prep["wt"] = jnp.concatenate([w1_mm, ws_mm], axis=0)  # (2C, C)
    return prep


def _vmem_budget():
    """(vmem_limit_bytes, t_tile target) tuned per TPU generation."""
    try:
        info = pltpu.get_tpu_info()
        cap = getattr(info, "vmem_capacity_bytes", None)
    except Exception:
        cap = None
    if cap is not None and cap <= 80 * 1024 * 1024:   # v7x-class: 64 MiB / TC
        return 40 * 1024 * 1024, 512
    if cap is not None:                               # v5e / v6e: 128 MiB
        return 64 * 1024 * 1024, 1024
    return 48 * 1024 * 1024, 1024                     # unknown: conservative


def _choose_t_tile(T, C, elem, d, target, vmem_limit):
    """Pick a tile length that fits the scoped VMEM budget (incl. temporaries)."""
    target = max(64, target - target % 8)
    while target > 64:
        work = (4 * target * C * elem            # x + out blocks, double-buffered
                + (target + 2 * d) * C * elem    # hp scratch
                + 6 * target * C * 4             # f32 temporaries (acc/h2/out/cat)
                + 5 * C * C * elem)              # weights (single-buffered)
        if work <= 0.75 * vmem_limit:
            break
        target //= 2
    T8 = ((T + 7) // 8) * 8
    if T8 <= target:
        return T8
    lo = max(64, target // 2)
    for cand in range(target, lo - 1, -8):
        if T % cand == 0:
            return cand            # exact tiling, no padding
    return target                  # ragged tail handled by padding


def _resnet_block_kernel(x_ref, halo_ref, w3_ref, b3_ref, *rest,
                         t_tile, dilation, fuse_tail):
    # x_ref   : (1, t_tile, C)      activation tile (also the shortcut input)
    # halo_ref: (1, 1, 2d, C)       d rows before + d rows after the tile
    # w3_ref  : (3, C, C)           dilated conv3 taps, (C_in, C_out) each
    # b3_ref  : (1, C) f32
    # then either  wt_ref (2C, C), bt_ref (1, C)            [fused tail]
    # or           w1_ref (C, C), ws_ref (C, C), bt_ref     [two matmuls]
    # o_ref, hp_ref (VMEM scratch (t_tile + 2d, C), compute dtype)
    if fuse_tail:
        wt_ref, bt_ref, o_ref, hp_ref = rest
    else:
        w1_ref, ws_ref, bt_ref, o_ref, hp_ref = rest

    d = dilation
    hp_dtype = hp_ref.dtype

    x = x_ref[0]                      # (t_tile, C), compute dtype
    halo = halo_ref[0, 0]             # (2d, C)

    # First LeakyReLU (f32 math, cast on the store).  The scratch holds the
    # halo'd activation tile in the compute dtype, so the three tap reads
    # below need no per-tap casts and the scratch footprint is halved in bf16.
    hp_ref[d:d + t_tile, :] = _leaky_relu(x.astype(jnp.float32)).astype(hp_dtype)
    hp_ref[0:d, :] = _leaky_relu(halo[0:d].astype(jnp.float32)).astype(hp_dtype)
    hp_ref[d + t_tile:d + t_tile + d, :] = _leaky_relu(
        halo[d:2 * d].astype(jnp.float32)).astype(hp_dtype)

    # Dilated k=3 conv as three shifted (t_tile, C) @ (C, C) MXU matmuls.
    # Accumulator seeded with tap 0 (no zero-fill + add).
    # NOTE(v7x): an f32 VMEM acc_ref with `+=` would let Mosaic use the MRB
    # in-place accumulate path; value-chain kept here (neutral on v5e/v6e).
    acc = jnp.dot(hp_ref[0:t_tile, :], w3_ref[0],
                  preferred_element_type=jnp.float32)
    acc = acc + jnp.dot(hp_ref[d:d + t_tile, :], w3_ref[1],
                        preferred_element_type=jnp.float32)
    acc = acc + jnp.dot(hp_ref[2 * d:2 * d + t_tile, :], w3_ref[2],
                        preferred_element_type=jnp.float32)

    h2 = _leaky_relu(acc + b3_ref[...])

    if fuse_tail:
        # C == 128: fuse block k=1 conv + shortcut into one K=2C matmul.
        cat = jnp.concatenate([h2.astype(hp_dtype), x.astype(hp_dtype)],
                              axis=-1)                       # (t_tile, 2C)
        out = jnp.dot(cat, wt_ref[...], preferred_element_type=jnp.float32)
    else:
        # K = C already fills the MXU: two matmuls, no (t_tile, 2C) concat.
        out = jnp.dot(h2.astype(hp_dtype), w1_ref[...],
                      preferred_element_type=jnp.float32)
        out = out + jnp.dot(x.astype(hp_dtype), ws_ref[...],
                            preferred_element_type=jnp.float32)
    out = out + bt_ref[...]
    o_ref[0] = out.astype(o_ref.dtype)


def _build_halo_fast(x_in, n_tiles, t_tile, d):
    """Halo via slices of adjacent tiles; reflection only at the true ends."""
    B, T, C = x_in.shape
    xt = x_in.reshape(B, n_tiles, t_tile, C)
    left_edge = jnp.flip(x_in[:, 1:d + 1, :], axis=1)[:, None]          # (B,1,d,C)
    right_edge = jnp.flip(x_in[:, T - 1 - d:T - 1, :], axis=1)[:, None]  # (B,1,d,C)
    if n_tiles > 1:
        left = jnp.concatenate([left_edge, xt[:, :-1, t_tile - d:, :]], axis=1)
        right = jnp.concatenate([xt[:, 1:, :d, :], right_edge], axis=1)
    else:
        left, right = left_edge, right_edge
    return jnp.concatenate([left, right], axis=2)            # (B, n_tiles, 2d, C)


def _build_halo_gather(x_in, n_tiles, t_tile, d):
    """Fallback halo (ragged T or d > t_tile): reflected/clamped index gather."""
    B, T, C = x_in.shape
    t0 = jnp.arange(n_tiles, dtype=jnp.int32)[:, None] * t_tile
    j = jnp.arange(d, dtype=jnp.int32)[None, :]
    idx = jnp.concatenate([t0 - d + j, t0 + t_tile + j], axis=1)   # (n_tiles, 2d)
    idx = jnp.where(idx < 0, -idx, idx)                  # left reflection
    idx = jnp.where(idx >= T, 2 * (T - 1) - idx, idx)    # right reflection
    idx = jnp.clip(idx, 0, T - 1)                        # padded/garbage rows only
    halo = jnp.take(x_in, idx.reshape(-1), axis=1)
    return halo.reshape(B, n_tiles, 2 * d, C)


def resnet_block_btc(x_btc, params, dilation=1, *, t_tile=None,
                     compute_dtype=None, out_dtype=None, prepared=None):
    """Channels-last ResnetBlock.  x_btc: (B, T, C) -> (B, T, C)."""
    B, T, C = x_btc.shape
    d = int(dilation)
    assert 1 <= d <= T - 1, "reflection pad requires 1 <= dilation <= T-1"
    orig_dtype = x_btc.dtype
    if out_dtype is None:
        out_dtype = compute_dtype if compute_dtype is not None else orig_dtype

    if prepared is None:
        prepared = prepare_weights(params, compute_dtype=compute_dtype)
    w3_mm, w1_mm, ws_mm = prepared["w3"], prepared["w1"], prepared["ws"]
    b3, b_tail = prepared["b3"], prepared["bt"]
    fuse_tail = prepared.get("wt") is not None

    mm_dtype = w3_mm.dtype
    x_in = x_btc.astype(mm_dtype)
    elem = jnp.dtype(mm_dtype).itemsize

    vmem_limit, tile_target = _vmem_budget()
    if C >= 1024:
        tile_target = max(128, tile_target // 2)
    if t_tile is None:
        t_tile = _choose_t_tile(T, C, elem, d, tile_target, vmem_limit)
    assert t_tile % 8 == 0 or t_tile >= T, "t_tile must be a multiple of 8"

    T_pad = -(-T // t_tile) * t_tile
    n_tiles = T_pad // t_tile
    P = T_pad - T

    # ---- per-tile halo + (possibly padded) input stream ----
    if P == 0 and d <= t_tile:
        halo = _build_halo_fast(x_in, n_tiles, t_tile, d)
        x_p = x_in
    else:
        halo = _build_halo_gather(x_in, n_tiles, t_tile, d)
        # Pad T with its own reflection so valid rows near the true end read
        # correct values; rows beyond that feed discarded outputs only.
        r = min(P, T - 1)
        x_p = jnp.pad(x_in, ((0, 0), (0, r), (0, 0)), mode="reflect")
        if P > r:
            x_p = jnp.pad(x_p, ((0, 0), (0, P - r), (0, 0)))

    consts = ([w3_mm, b3]
              + ([prepared["wt"]] if fuse_tail else [w1_mm, ws_mm])
              + [b_tail])

    kernel = functools.partial(_resnet_block_kernel, t_tile=t_tile,
                               dilation=d, fuse_tail=fuse_tail)

    cost = pl.CostEstimate(
        flops=int(10 * B * T_pad * C * C),
        transcendentals=0,
        bytes_accessed=int(elem * (B * T_pad * C + B * n_tiles * 2 * d * C
                                   + 5 * C * C)
                           + jnp.dtype(out_dtype).itemsize * B * T_pad * C
                           + 4 * 2 * C),
    )

    def build_and_call(single_buffer_consts):
        def cspec(arr):
            shape = tuple(arr.shape)
            imap = lambda b, t, _n=len(shape): (0,) * _n
            if single_buffer_consts:
                # Constant index_map -> DMA'd once; single-buffer to free VMEM.
                return pl.BlockSpec(shape, imap, pipeline_mode=pl.Buffered(1))
            return pl.BlockSpec(shape, imap)

        in_specs = ([pl.BlockSpec((1, t_tile, C), lambda b, t: (b, t, 0)),
                     pl.BlockSpec((1, 1, 2 * d, C), lambda b, t: (b, t, 0, 0))]
                    + [cspec(a) for a in consts])

        return pl.pallas_call(
            kernel,
            out_shape=jax.ShapeDtypeStruct((B, T_pad, C), out_dtype),
            grid_spec=pltpu.PrefetchScalarGridSpec(
                num_scalar_prefetch=0,
                grid=(B, n_tiles),
                in_specs=in_specs,
                out_specs=pl.BlockSpec((1, t_tile, C), lambda b, t: (b, t, 0)),
                scratch_shapes=[pltpu.VMEM((t_tile + 2 * d, C), mm_dtype)],
            ),
            compiler_params=pltpu.CompilerParams(
                dimension_semantics=("parallel", "parallel"),
                vmem_limit_bytes=int(vmem_limit)),
            cost_estimate=cost,
        )(x_p, halo, *consts)

    try:
        out = build_and_call(True)
    except Exception:
        # pl.Buffered(1) not supported on this jax/Mosaic build: fall back to
        # default (double-buffered) constant operands.
        out = build_and_call(False)

    if P:
        out = out[:, :T, :]
    return out


def resnet_block(x_ncw, params, dilation=1, *, t_tile=None, compute_dtype=None,
                 out_dtype=None, prepared=None):
    """PyTorch-interface wrapper: x_ncw (B, C, T) -> (B, C, T).

    Prefer resnet_block_btc in a full model so NCW<->NTC transposes are paid
    once at model entry/exit rather than around every block.
    """
    x_btc = jnp.transpose(x_ncw, (0, 2, 1))
    out = resnet_block_btc(x_btc, params, dilation, t_tile=t_tile,
                           compute_dtype=compute_dtype, out_dtype=out_dtype,
                           prepared=prepared)
    return jnp.transpose(out, (0, 2, 1))


# ---- pure-JAX reference (for correctness check) ----
def resnet_block_ref(x_ncw, params, dilation=1):
    d = dilation
    w3 = _wn_effective_weight(params["v3"], params["g3"])
    w1 = _wn_effective_weight(params["v1"], params["g1"])
    ws = _wn_effective_weight(params["vs"], params["gs"])

    def conv1d(x, w, b, dil):
        dn = jax.lax.conv_dimension_numbers(x.shape, w.shape,
                                            ("NCH", "OIH", "NCH"))
        y = jax.lax.conv_general_dilated(x, w, window_strides=(1,),
                                         padding="VALID",
                                         rhs_dilation=(dil,),
                                         dimension_numbers=dn)
        return y + b[None, :, None]

    h = _leaky_relu(x_ncw)
    h = jnp.pad(h, ((0, 0), (0, 0), (d, d)), mode="reflect")
    h = conv1d(h, w3, params["b3"], d)
    h = _leaky_relu(h)
    h = conv1d(h, w1, params["b1"], 1)
    s = conv1d(x_ncw, ws, params["bs"], 1)
    return s + h


def init_params(key, dim):
    ks = jax.random.split(key, 9)
    scale = 0.1
    return {
        "v3": scale * jax.random.normal(ks[0], (dim, dim, 3), jnp.float32),
        "g3": 1.0 + 0.1 * jax.random.normal(ks[1], (dim,), jnp.float32),
        "b3": scale * jax.random.normal(ks[2], (dim,), jnp.float32),
        "v1": scale * jax.random.normal(ks[3], (dim, dim, 1), jnp.float32),
        "g1": 1.0 + 0.1 * jax.random.normal(ks[4], (dim,), jnp.float32),
        "b1": scale * jax.random.normal(ks[5], (dim,), jnp.float32),
        "vs": scale * jax.random.normal(ks[6], (dim, dim, 1), jnp.float32),
        "gs": 1.0 + 0.1 * jax.random.normal(ks[7], (dim,), jnp.float32),
        "bs": scale * jax.random.normal(ks[8], (dim,), jnp.float32),
    }


if __name__ == "__main__":
    key = jax.random.PRNGKey(0)
    k1, k2, k3, k4 = jax.random.split(key, 4)

    # Case 1: tiny module shapes (B=2, C=4, T=16), multi-tile, reflection
    # halos at both sequence ends, two dilations (f32 exact path).
    B, dim, T = 2, 4, 16
    x = jax.random.normal(k1, (B, dim, T), jnp.float32)     # NCW like PyTorch
    params = init_params(k2, dim)
    for dilation in (1, 3):
        out = jax.block_until_ready(
            resnet_block(x, params, dilation=dilation, t_tile=8))
        ref = resnet_block_ref(x, params, dilation=dilation)
        assert out.shape == (B, dim, T)
        err = float(jnp.max(jnp.abs(out - ref)))
        assert jnp.allclose(out, ref, atol=1e-4, rtol=1e-4), err

    # Case 2: awkward T (ragged tail -> padded/gather halo path).
    T2 = 20
    x2 = jax.random.normal(k3, (B, dim, T2), jnp.float32)
    out2 = jax.block_until_ready(resnet_block(x2, params, dilation=3, t_tile=8))
    ref2 = resnet_block_ref(x2, params, dilation=3)
    err2 = float(jnp.max(jnp.abs(out2 - ref2)))
    assert jnp.allclose(out2, ref2, atol=1e-4, rtol=1e-4), err2

    # Case 3: lane-aligned C=128, dilation=9 (fused-tail path), f32 and bf16.
    B3, C3, T3 = 1, 128, 64
    x3 = jax.random.normal(k4, (B3, C3, T3), jnp.float32)
    params3 = init_params(k3, C3)
    ref3 = resnet_block_ref(x3, params3, dilation=9)
    out3 = jax.block_until_ready(
        resnet_block(x3, params3, dilation=9, t_tile=32))
    err3 = float(jnp.max(jnp.abs(out3 - ref3)))
    assert jnp.allclose(out3, ref3, atol=2e-2, rtol=2e-2), err3  # MXU f32 precision
    out3b = jax.block_until_ready(
        resnet_block(x3, params3, dilation=9, t_tile=32,
                     compute_dtype=jnp.bfloat16))
    rel = float(jnp.linalg.norm(out3b.astype(jnp.float32) - ref3)
                / (jnp.linalg.norm(ref3) + 1e-6))
    assert rel < 5e-2, rel

    print("KERNEL_OK")
</pallas_src>

<mosaic_0001>
module attributes {stable_mosaic.version = 11 : i64} {
  func.func @_resnet_block_kernel(%arg0: i32, %arg1: i32, %arg2: memref<1x8x4xf32, #tpu.memory_space<vmem>>, %arg3: memref<1x1x2x4xf32, #tpu.memory_space<vmem>>, %arg4: memref<3x4x4xf32, #tpu.memory_space<vmem>>, %arg5: memref<1x4xf32, #tpu.memory_space<vmem>>, %arg6: memref<4x4xf32, #tpu.memory_space<vmem>>, %arg7: memref<4x4xf32, #tpu.memory_space<vmem>>, %arg8: memref<1x4xf32, #tpu.memory_space<vmem>>, %arg9: memref<1x8x4xf32, #tpu.memory_space<vmem>>, %arg10: memref<10x4xf32, #tpu.memory_space<vmem>>) attributes {dimension_semantics = [#tpu.dimension_semantics<parallel>, #tpu.dimension_semantics<parallel>], iteration_bounds = array<i64: 2, 2>, scalar_prefetch = 0 : i64, scratch_operands = 1 : i64, tpu.core_type = #tpu.core_type<tc>, window_params = [{transform_indices = @transform_0, window_bounds = array<i64: 1, 8, 4>}, {transform_indices = @transform_1, window_bounds = array<i64: 1, 1, 2, 4>}, {pipeline_mode = #tpu.pipeline_mode<synchronous>, transform_indices = @transform_2, window_bounds = array<i64: 3, 4, 4>}, {pipeline_mode = #tpu.pipeline_mode<synchronous>, transform_indices = @transform_3, window_bounds = array<i64: 1, 4>}, {pipeline_mode = #tpu.pipeline_mode<synchronous>, transform_indices = @transform_4, window_bounds = array<i64: 4, 4>}, {pipeline_mode = #tpu.pipeline_mode<synchronous>, transform_indices = @transform_5, window_bounds = array<i64: 4, 4>}, {pipeline_mode = #tpu.pipeline_mode<synchronous>, transform_indices = @transform_6, window_bounds = array<i64: 1, 4>}, {transform_indices = @transform_7, window_bounds = array<i64: 1, 8, 4>}]} {
    %c0 = arith.constant 0 : index
    %c0_0 = arith.constant 0 : index
    %c0_1 = arith.constant 0 : index
    %0 = vector.load %arg2[%c0, %c0_0, %c0_1] : memref<1x8x4xf32, #tpu.memory_space<vmem>>, vector<1x8x4xf32>
    %1 = vector.shape_cast %0 : vector<1x8x4xf32> to vector<8x4xf32>
    %c0_2 = arith.constant 0 : index
    %c0_3 = arith.constant 0 : index
    %c0_4 = arith.constant 0 : index
    %c0_5 = arith.constant 0 : index
    %2 = vector.load %arg3[%c0_2, %c0_3, %c0_4, %c0_5] : memref<1x1x2x4xf32, #tpu.memory_space<vmem>>, vector<1x1x2x4xf32>
    %3 = vector.shape_cast %2 : vector<1x1x2x4xf32> to vector<2x4xf32>
    %cst = arith.constant 0.000000e+00 : f32
    %4 = vector.broadcast %cst : f32 to vector<8x4xf32>
    %5 = arith.cmpf ogt, %1, %4 : vector<8x4xf32>
    %cst_6 = arith.constant 2.000000e-01 : f32
    %6 = vector.broadcast %cst_6 : f32 to vector<8x4xf32>
    %7 = arith.mulf %6, %1 : vector<8x4xf32>
    %8 = arith.select %5, %1, %7 : vector<8x4xi1>, vector<8x4xf32>
    %c1 = arith.constant 1 : index
    %c0_7 = arith.constant 0 : index
    %9 = vector.load %arg10[%c1, %c0_7] : memref<10x4xf32, #tpu.memory_space<vmem>>, vector<8x4xf32>
    tpu.vector_store %arg10[%c1, %c0_7], %8 {strides = array<i32>} : memref<10x4xf32, #tpu.memory_space<vmem>>, vector<8x4xf32>,
    %10 = vector.extract_strided_slice %3 {offsets = [0, 0], sizes = [1, 4], strides = [1, 1]} : vector<2x4xf32> to vector<1x4xf32>
    %cst_8 = arith.constant 0.000000e+00 : f32
    %11 = vector.broadcast %cst_8 : f32 to vector<1x4xf32>
    %12 = arith.cmpf ogt, %10, %11 : vector<1x4xf32>
    %cst_9 = arith.constant 2.000000e-01 : f32
    %13 = vector.broadcast %cst_9 : f32 to vector<1x4xf32>
    %14 = arith.mulf %13, %10 : vector<1x4xf32>
    %15 = arith.select %12, %10, %14 : vector<1x4xi1>, vector<1x4xf32>
    %c0_10 = arith.constant 0 : index
    %c0_11 = arith.constant 0 : index
    %16 = vector.load %arg10[%c0_10, %c0_11] : memref<10x4xf32, #tpu.memory_space<vmem>>, vector<1x4xf32>
    tpu.vector_store %arg10[%c0_10, %c0_11], %15 {strides = array<i32>} : memref<10x4xf32, #tpu.memory_space<vmem>>, vector<1x4xf32>,
    %17 = vector.extract_strided_slice %3 {offsets = [1, 0], sizes = [1, 4], strides = [1, 1]} : vector<2x4xf32> to vector<1x4xf32>
    %cst_12 = arith.constant 0.000000e+00 : f32
    %18 = vector.broadcast %cst_12 : f32 to vector<1x4xf32>
    %19 = arith.cmpf ogt, %17, %18 : vector<1x4xf32>
    %cst_13 = arith.constant 2.000000e-01 : f32
    %20 = vector.broadcast %cst_13 : f32 to vector<1x4xf32>
    %21 = arith.mulf %20, %17 : vector<1x4xf32>
    %22 = arith.select %19, %17, %21 : vector<1x4xi1>, vector<1x4xf32>
    %c9 = arith.constant 9 : index
    %c0_14 = arith.constant 0 : index
    %23 = vector.load %arg10[%c9, %c0_14] : memref<10x4xf32, #tpu.memory_space<vmem>>, vector<1x4xf32>
    tpu.vector_store %arg10[%c9, %c0_14], %22 {strides = array<i32>} : memref<10x4xf32, #tpu.memory_space<vmem>>, vector<1x4xf32>,
    %c0_15 = arith.constant 0 : index
    %c0_16 = arith.constant 0 : index
    %24 = vector.load %arg10[%c0_15, %c0_16] : memref<10x4xf32, #tpu.memory_space<vmem>>, vector<8x4xf32>
    %c0_17 = arith.constant 0 : index
    %c0_18 = arith.constant 0 : index
    %c0_19 = arith.constant 0 : index
    %25 = vector.load %arg4[%c0_17, %c0_18, %c0_19] : memref<3x4x4xf32, #tpu.memory_space<vmem>>, vector<1x4x4xf32>
    %26 = vector.shape_cast %25 : vector<1x4x4xf32> to vector<4x4xf32>
    %cst_20 = arith.constant dense<0.000000e+00> : vector<8x4xf32>
    %27 = tpu.matmul %24, %26, %cst_20 {dimension_numbers = #tpu.dot_dimension_numbers<[1], [0], [0], [1], [0, 0, 1, 1], [], []>} : vector<8x4xf32>, vector<4x4xf32>, vector<8x4xf32> -> vector<8x4xf32>
    %c1_21 = arith.constant 1 : index
    %c0_22 = arith.constant 0 : index
    %28 = vector.load %arg10[%c1_21, %c0_22] : memref<10x4xf32, #tpu.memory_space<vmem>>, vector<8x4xf32>
    %c1_23 = arith.constant 1 : index
    %c0_24 = arith.constant 0 : index
    %c0_25 = arith.constant 0 : index
    %29 = vector.load %arg4[%c1_23, %c0_24, %c0_25] : memref<3x4x4xf32, #tpu.memory_space<vmem>>, vector<1x4x4xf32>
    %30 = vector.shape_cast %29 : vector<1x4x4xf32> to vector<4x4xf32>
    %cst_26 = arith.constant dense<0.000000e+00> : vector<8x4xf32>
    %31 = tpu.matmul %28, %30, %cst_26 {dimension_numbers = #tpu.dot_dimension_numbers<[1], [0], [0], [1], [0, 0, 1, 1], [], []>} : vector<8x4xf32>, vector<4x4xf32>, vector<8x4xf32> -> vector<8x4xf32>
    %32 = arith.addf %27, %31 : vector<8x4xf32>
    %c2 = arith.constant 2 : index
    %c0_27 = arith.constant 0 : index
    %33 = vector.load %arg10[%c2, %c0_27] : memref<10x4xf32, #tpu.memory_space<vmem>>, vector<8x4xf32>
    %c2_28 = arith.constant 2 : index
    %c0_29 = arith.constant 0 : index
    %c0_30 = arith.constant 0 : index
    %34 = vector.load %arg4[%c2_28, %c0_29, %c0_30] : memref<3x4x4xf32, #tpu.memory_space<vmem>>, vector<1x4x4xf32>
    %35 = vector.shape_cast %34 : vector<1x4x4xf32> to vector<4x4xf32>
    %cst_31 = arith.constant dense<0.000000e+00> : vector<8x4xf32>
    %36 = tpu.matmul %33, %35, %cst_31 {dimension_numbers = #tpu.dot_dimension_numbers<[1], [0], [0], [1], [0, 0, 1, 1], [], []>} : vector<8x4xf32>, vector<4x4xf32>, vector<8x4xf32> -> vector<8x4xf32>
    %37 = arith.addf %32, %36 : vector<8x4xf32>
    %c0_32 = arith.constant 0 : index
    %c0_33 = arith.constant 0 : index
    %38 = vector.load %arg5[%c0_32, %c0_33] : memref<1x4xf32, #tpu.memory_space<vmem>>, vector<1x4xf32>
    %39 = vector.broadcast %38 : vector<1x4xf32> to vector<8x4xf32>
    %40 = arith.addf %37, %39 : vector<8x4xf32>
    %cst_34 = arith.constant 0.000000e+00 : f32
    %41 = vector.broadcast %cst_34 : f32 to vector<8x4xf32>
    %42 = arith.cmpf ogt, %40, %41 : vector<8x4xf32>
    %cst_35 = arith.constant 2.000000e-01 : f32
    %43 = vector.broadcast %cst_35 : f32 to vector<8x4xf32>
    %44 = arith.mulf %43, %40 : vector<8x4xf32>
    %45 = arith.select %42, %40, %44 : vector<8x4xi1>, vector<8x4xf32>
    %c0_36 = arith.constant 0 : index
    %c0_37 = arith.constant 0 : index
    %46 = vector.load %arg6[%c0_36, %c0_37] : memref<4x4xf32, #tpu.memory_space<vmem>>, vector<4x4xf32>
    %cst_38 = arith.constant dense<0.000000e+00> : vector<8x4xf32>
    %47 = tpu.matmul %45, %46, %cst_38 {dimension_numbers = #tpu.dot_dimension_numbers<[1], [0], [0], [1], [0, 0, 1, 1], [], []>} : vector<8x4xf32>, vector<4x4xf32>, vector<8x4xf32> -> vector<8x4xf32>
    %c0_39 = arith.constant 0 : index
    %c0_40 = arith.constant 0 : index
    %48 = vector.load %arg7[%c0_39, %c0_40] : memref<4x4xf32, #tpu.memory_space<vmem>>, vector<4x4xf32>
    %cst_41 = arith.constant dense<0.000000e+00> : vector<8x4xf32>
    %49 = tpu.matmul %1, %48, %cst_41 {dimension_numbers = #tpu.dot_dimension_numbers<[1], [0], [0], [1], [0, 0, 1, 1], [], []>} : vector<8x4xf32>, vector<4x4xf32>, vector<8x4xf32> -> vector<8x4xf32>
    %50 = arith.addf %47, %49 : vector<8x4xf32>
    %c0_42 = arith.constant 0 : index
    %c0_43 = arith.constant 0 : index
    %51 = vector.load %arg8[%c0_42, %c0_43] : memref<1x4xf32, #tpu.memory_space<vmem>>, vector<1x4xf32>
    %52 = vector.broadcast %51 : vector<1x4xf32> to vector<8x4xf32>
    %53 = arith.addf %50, %52 : vector<8x4xf32>
    %c0_44 = arith.constant 0 : index
    %c0_45 = arith.constant 0 : index
    %c0_46 = arith.constant 0 : index
    %54 = vector.load %arg9[%c0_44, %c0_45, %c0_46] : memref<1x8x4xf32, #tpu.memory_space<vmem>>, vector<1x8x4xf32>
    %55 = vector.shape_cast %54 : vector<1x8x4xf32> to vector<8x4xf32>
    %56 = vector.shape_cast %53 : vector<8x4xf32> to vector<1x8x4xf32>
    tpu.vector_store %arg9[%c0_44, %c0_45, %c0_46], %56 {strides = array<i32>} : memref<1x8x4xf32, #tpu.memory_space<vmem>>, vector<1x8x4xf32>,
    return
  }
  func.func @transform_0(%arg0: i32, %arg1: i32) -> (i32, i32, i32) {
    %c0_i32 = arith.constant 0 : i32
    %c0_i32_0 = arith.constant 0 : i32
    return %arg0, %arg1, %c0_i32 : i32, i32, i32
  }
  func.func @transform_1(%arg0: i32, %arg1: i32) -> (i32, i32, i32, i32) {
    %c0_i32 = arith.constant 0 : i32
    %c0_i32_0 = arith.constant 0 : i32
    %c0_i32_1 = arith.constant 0 : i32
    return %arg0, %arg1, %c0_i32, %c0_i32_0 : i32, i32, i32, i32
  }
  func.func @transform_2(%arg0: i32, %arg1: i32) -> (i32, i32, i32) {
    %c0_i32 = arith.constant 0 : i32
    %c0_i32_0 = arith.constant 0 : i32
    %c0_i32_1 = arith.constant 0 : i32
    %c0_i32_2 = arith.constant 0 : i32
    return %c0_i32, %c0_i32_0, %c0_i32_1 : i32, i32, i32
  }
  func.func @transform_3(%arg0: i32, %arg1: i32) -> (i32, i32) {
    %c0_i32 = arith.constant 0 : i32
    %c0_i32_0 = arith.constant 0 : i32
    %c0_i32_1 = arith.constant 0 : i32
    return %c0_i32, %c0_i32_0 : i32, i32
  }
  func.func @transform_4(%arg0: i32, %arg1: i32) -> (i32, i32) {
    %c0_i32 = arith.constant 0 : i32
    %c0_i32_0 = arith.constant 0 : i32
    %c0_i32_1 = arith.constant 0 : i32
    return %c0_i32, %c0_i32_0 : i32, i32
  }
  func.func @transform_5(%arg0: i32, %arg1: i32) -> (i32, i32) {
    %c0_i32 = arith.constant 0 : i32
    %c0_i32_0 = arith.constant 0 : i32
    %c0_i32_1 = arith.constant 0 : i32
    return %c0_i32, %c0_i32_0 : i32, i32
  }
  func.func @transform_6(%arg0: i32, %arg1: i32) -> (i32, i32) {
    %c0_i32 = arith.constant 0 : i32
    %c0_i32_0 = arith.constant 0 : i32
    %c0_i32_1 = arith.constant 0 : i32
    return %c0_i32, %c0_i32_0 : i32, i32
  }
  func.func @transform_7(%arg0: i32, %arg1: i32) -> (i32, i32, i32) {
    %c0_i32 = arith.constant 0 : i32
    %c0_i32_0 = arith.constant 0 : i32
    return %arg0, %arg1, %c0_i32 : i32, i32, i32
  }
}

module attributes {stable_mosaic.version = 11 : i64} {
  func.func @_resnet_block_kernel(%arg0: i32, %arg1: i32, %arg2: memref<1x8x4xf32, #tpu.memory_space<vmem>>, %arg3: memref<1x1x2x4xf32, #tpu.memory_space<vmem>>, %arg4: memref<3x4x4xf32, #tpu.memory_space<vmem>>, %arg5: memref<1x4xf32, #tpu.memory_space<vmem>>, %arg6: memref<4x4xf32, #tpu.memory_space<vmem>>, %arg7: memref<4x4xf32, #tpu.memory_space<vmem>>, %arg8: memref<1x4xf32, #tpu.memory_space<vmem>>, %arg9: memref<1x8x4xf32, #tpu.memory_space<vmem>>, %arg10: memref<10x4xf32, #tpu.memory_space<vmem>>) attributes {dimension_semantics = [#tpu.dimension_semantics<parallel>, #tpu.dimension_semantics<parallel>], iteration_bounds = array<i64: 2, 2>, scalar_prefetch = 0 : i64, scratch_operands = 1 : i64, tpu.core_type = #tpu.core_type<tc>, window_params = [{transform_indices = @transform_0, window_bounds = array<i64: 1, 8, 4>}, {transform_indices = @transform_1, window_bounds = array<i64: 1, 1, 2, 4>}, {pipeline_mode = #tpu.pipeline_mode<synchronous>, transform_indices = @transform_2, window_bounds = array<i64: 3, 4, 4>}, {pipeline_mode = #tpu.pipeline_mode<synchronous>, transform_indices = @transform_3, window_bounds = array<i64: 1, 4>}, {pipeline_mode = #tpu.pipeline_mode<synchronous>, transform_indices = @transform_4, window_bounds = array<i64: 4, 4>}, {pipeline_mode = #tpu.pipeline_mode<synchronous>, transform_indices = @transform_5, window_bounds = array<i64: 4, 4>}, {pipeline_mode = #tpu.pipeline_mode<synchronous>, transform_indices = @transform_6, window_bounds = array<i64: 1, 4>}, {transform_indices = @transform_7, window_bounds = array<i64: 1, 8, 4>}]} {
    %c0 = arith.constant 0 : index
    %c0_0 = arith.constant 0 : index
    %c0_1 = arith.constant 0 : index
    %0 = vector.load %arg2[%c0, %c0_0, %c0_1] : memref<1x8x4xf32, #tpu.memory_space<vmem>>, vector<1x8x4xf32>
    %1 = vector.shape_cast %0 : vector<1x8x4xf32> to vector<8x4xf32>
    %c0_2 = arith.constant 0 : index
    %c0_3 = arith.constant 0 : index
    %c0_4 = arith.constant 0 : index
    %c0_5 = arith.constant 0 : index
    %2 = vector.load %arg3[%c0_2, %c0_3, %c0_4, %c0_5] : memref<1x1x2x4xf32, #tpu.memory_space<vmem>>, vector<1x1x2x4xf32>
    %3 = vector.shape_cast %2 : vector<1x1x2x4xf32> to vector<2x4xf32>
    %cst = arith.constant 0.000000e+00 : f32
    %4 = vector.broadcast %cst : f32 to vector<8x4xf32>
    %5 = arith.cmpf ogt, %1, %4 : vector<8x4xf32>
    %cst_6 = arith.constant 2.000000e-01 : f32
    %6 = vector.broadcast %cst_6 : f32 to vector<8x4xf32>
    %7 = arith.mulf %6, %1 : vector<8x4xf32>
    %8 = arith.select %5, %1, %7 : vector<8x4xi1>, vector<8x4xf32>
    %c1 = arith.constant 1 : index
    %c0_7 = arith.constant 0 : index
    %9 = vector.load %arg10[%c1, %c0_7] : memref<10x4xf32, #tpu.memory_space<vmem>>, vector<8x4xf32>
    tpu.vector_store %arg10[%c1, %c0_7], %8 {strides = array<i32>} : memref<10x4xf32, #tpu.memory_space<vmem>>, vector<8x4xf32>,
    %10 = vector.extract_strided_slice %3 {offsets = [0, 0], sizes = [1, 4], strides = [1, 1]} : vector<2x4xf32> to vector<1x4xf32>
    %cst_8 = arith.constant 0.000000e+00 : f32
    %11 = vector.broadcast %cst_8 : f32 to vector<1x4xf32>
    %12 = arith.cmpf ogt, %10, %11 : vector<1x4xf32>
    %cst_9 = arith.constant 2.000000e-01 : f32
    %13 = vector.broadcast %cst_9 : f32 to vector<1x4xf32>
    %14 = arith.mulf %13, %10 : vector<1x4xf32>
    %15 = arith.select %12, %10, %14 : vector<1x4xi1>, vector<1x4xf32>
    %c0_10 = arith.constant 0 : index
    %c0_11 = arith.constant 0 : index
    %16 = vector.load %arg10[%c0_10, %c0_11] : memref<10x4xf32, #tpu.memory_space<vmem>>, vector<1x4xf32>
    tpu.vector_store %arg10[%c0_10, %c0_11], %15 {strides = array<i32>} : memref<10x4xf32, #tpu.memory_space<vmem>>, vector<1x4xf32>,
    %17 = vector.extract_strided_slice %3 {offsets = [1, 0], sizes = [1, 4], strides = [1, 1]} : vector<2x4xf32> to vector<1x4xf32>
    %cst_12 = arith.constant 0.000000e+00 : f32
    %18 = vector.broadcast %cst_12 : f32 to vector<1x4xf32>
    %19 = arith.cmpf ogt, %17, %18 : vector<1x4xf32>
    %cst_13 = arith.constant 2.000000e-01 : f32
    %20 = vector.broadcast %cst_13 : f32 to vector<1x4xf32>
    %21 = arith.mulf %20, %17 : vector<1x4xf32>
    %22 = arith.select %19, %17, %21 : vector<1x4xi1>, vector<1x4xf32>
    %c9 = arith.constant 9 : index
    %c0_14 = arith.constant 0 : index
    %23 = vector.load %arg10[%c9, %c0_14] : memref<10x4xf32, #tpu.memory_space<vmem>>, vector<1x4xf32>
    tpu.vector_store %arg10[%c9, %c0_14], %22 {strides = array<i32>} : memref<10x4xf32, #tpu.memory_space<vmem>>, vector<1x4xf32>,
    %c0_15 = arith.constant 0 : index
    %c0_16 = arith.constant 0 : index
    %24 = vector.load %arg10[%c0_15, %c0_16] : memref<10x4xf32, #tpu.memory_space<vmem>>, vector<8x4xf32>
    %c0_17 = arith.constant 0 : index
    %c0_18 = arith.constant 0 : index
    %c0_19 = arith.constant 0 : index
    %25 = vector.load %arg4[%c0_17, %c0_18, %c0_19] : memref<3x4x4xf32, #tpu.memory_space<vmem>>, vector<1x4x4xf32>
    %26 = vector.shape_cast %25 : vector<1x4x4xf32> to vector<4x4xf32>
    %cst_20 = arith.constant dense<0.000000e+00> : vector<8x4xf32>
    %27 = tpu.matmul %24, %26, %cst_20 {dimension_numbers = #tpu.dot_dimension_numbers<[1], [0], [0], [1], [0, 0, 1, 1], [], []>} : vector<8x4xf32>, vector<4x4xf32>, vector<8x4xf32> -> vector<8x4xf32>
    %c1_21 = arith.constant 1 : index
    %c0_22 = arith.constant 0 : index
    %28 = vector.load %arg10[%c1_21, %c0_22] : memref<10x4xf32, #tpu.memory_space<vmem>>, vector<8x4xf32>
    %c1_23 = arith.constant 1 : index
    %c0_24 = arith.constant 0 : index
    %c0_25 = arith.constant 0 : index
    %29 = vector.load %arg4[%c1_23, %c0_24, %c0_25] : memref<3x4x4xf32, #tpu.memory_space<vmem>>, vector<1x4x4xf32>
    %30 = vector.shape_cast %29 : vector<1x4x4xf32> to vector<4x4xf32>
    %cst_26 = arith.constant dense<0.000000e+00> : vector<8x4xf32>
    %31 = tpu.matmul %28, %30, %cst_26 {dimension_numbers = #tpu.dot_dimension_numbers<[1], [0], [0], [1], [0, 0, 1, 1], [], []>} : vector<8x4xf32>, vector<4x4xf32>, vector<8x4xf32> -> vector<8x4xf32>
    %32 = arith.addf %27, %31 : vector<8x4xf32>
    %c2 = arith.constant 2 : index
    %c0_27 = arith.constant 0 : index
    %33 = vector.load %arg10[%c2, %c0_27] : memref<10x4xf32, #tpu.memory_space<vmem>>, vector<8x4xf32>
    %c2_28 = arith.constant 2 : index
    %c0_29 = arith.constant 0 : index
    %c0_30 = arith.constant 0 : index
    %34 = vector.load %arg4[%c2_28, %c0_29, %c0_30] : memref<3x4x4xf32, #tpu.memory_space<vmem>>, vector<1x4x4xf32>
    %35 = vector.shape_cast %34 : vector<1x4x4xf32> to vector<4x4xf32>
    %cst_31 = arith.constant dense<0.000000e+00> : vector<8x4xf32>
    %36 = tpu.matmul %33, %35, %cst_31 {dimension_numbers = #tpu.dot_dimension_numbers<[1], [0], [0], [1], [0, 0, 1, 1], [], []>} : vector<8x4xf32>, vector<4x4xf32>, vector<8x4xf32> -> vector<8x4xf32>
    %37 = arith.addf %32, %36 : vector<8x4xf32>
    %c0_32 = arith.constant 0 : index
    %c0_33 = arith.constant 0 : index
    %38 = vector.load %arg5[%c0_32, %c0_33] : memref<1x4xf32, #tpu.memory_space<vmem>>, vector<1x4xf32>
    %39 = vector.broadcast %38 : vector<1x4xf32> to vector<8x4xf32>
    %40 = arith.addf %37, %39 : vector<8x4xf32>
    %cst_34 = arith.constant 0.000000e+00 : f32
    %41 = vector.broadcast %cst_34 : f32 to vector<8x4xf32>
    %42 = arith.cmpf ogt, %40, %41 : vector<8x4xf32>
    %cst_35 = arith.constant 2.000000e-01 : f32
    %43 = vector.broadcast %cst_35 : f32 to vector<8x4xf32>
    %44 = arith.mulf %43, %40 : vector<8x4xf32>
    %45 = arith.select %42, %40, %44 : vector<8x4xi1>, vector<8x4xf32>
    %c0_36 = arith.constant 0 : index
    %c0_37 = arith.constant 0 : index
    %46 = vector.load %arg6[%c0_36, %c0_37] : memref<4x4xf32, #tpu.memory_space<vmem>>, vector<4x4xf32>
    %cst_38 = arith.constant dense<0.000000e+00> : vector<8x4xf32>
    %47 = tpu.matmul %45, %46, %cst_38 {dimension_numbers = #tpu.dot_dimension_numbers<[1], [0], [0], [1], [0, 0, 1, 1], [], []>} : vector<8x4xf32>, vector<4x4xf32>, vector<8x4xf32> -> vector<8x4xf32>
    %c0_39 = arith.constant 0 : index
    %c0_40 = arith.constant 0 : index
    %48 = vector.load %arg7[%c0_39, %c0_40] : memref<4x4xf32, #tpu.memory_space<vmem>>, vector<4x4xf32>
    %cst_41 = arith.constant dense<0.000000e+00> : vector<8x4xf32>
    %49 = tpu.matmul %1, %48, %cst_41 {dimension_numbers = #tpu.dot_dimension_numbers<[1], [0], [0], [1], [0, 0, 1, 1], [], []>} : vector<8x4xf32>, vector<4x4xf32>, vector<8x4xf32> -> vector<8x4xf32>
    %50 = arith.addf %47, %49 : vector<8x4xf32>
    %c0_42 = arith.constant 0 : index
    %c0_43 = arith.constant 0 : index
    %51 = vector.load %arg8[%c0_42, %c0_43] : memref<1x4xf32, #tpu.memory_space<vmem>>, vector<1x4xf32>
    %52 = vector.broadcast %51 : vector<1x4xf32> to vector<8x4xf32>
    %53 = arith.addf %50, %52 : vector<8x4xf32>
    %c0_44 = arith.constant 0 : index
    %c0_45 = arith.constant 0 : index
    %c0_46 = arith.constant 0 : index
    %54 = vector.load %arg9[%c0_44, %c0_45, %c0_46] : memref<1x8x4xf32, #tpu.memory_space<vmem>>, vector<1x8x4xf32>
    %55 = vector.shape_cast %54 : vector<1x8x4xf32> to vector<8x4xf32>
    %56 = vector.shape_cast %53 : vector<8x4xf32> to vector<1x8x4xf32>
    tpu.vector_store %arg9[%c0_44, %c0_45, %c0_46], %56 {strides = array<i32>} : memref<1x8x4xf32, #tpu.memory_space<vmem>>, vector<1x8x4xf32>,
    return
  }
  func.func @transform_0(%arg0: i32, %arg1: i32) -> (i32, i32, i32) {
    %c0_i32 = arith.constant 0 : i32
    %c0_i32_0 = arith.constant 0 : i32
    return %arg0, %arg1, %c0_i32 : i32, i32, i32
  }
  func.func @transform_1(%arg0: i32, %arg1: i32) -> (i32, i32, i32, i32) {
    %c0_i32 = arith.constant 0 : i32
    %c0_i32_0 = arith.constant 0 : i32
    %c0_i32_1 = arith.constant 0 : i32
    return %arg0, %arg1, %c0_i32, %c0_i32_0 : i32, i32, i32, i32
  }
  func.func @transform_2(%arg0: i32, %arg1: i32) -> (i32, i32, i32) {
    %c0_i32 = arith.constant 0 : i32
    %c0_i32_0 = arith.constant 0 : i32
    %c0_i32_1 = arith.constant 0 : i32
    %c0_i32_2 = arith.constant 0 : i32
    return %c0_i32, %c0_i32_0, %c0_i32_1 : i32, i32, i32
  }
  func.func @transform_3(%arg0: i32, %arg1: i32) -> (i32, i32) {
    %c0_i32 = arith.constant 0 : i32
    %c0_i32_0 = arith.constant 0 : i32
    %c0_i32_1 = arith.constant 0 : i32
    return %c0_i32, %c0_i32_0 : i32, i32
  }
  func.func @transform_4(%arg0: i32, %arg1: i32) -> (i32, i32) {
    %c0_i32 = arith.constant 0 : i32
    %c0_i32_0 = arith.constant 0 : i32
    %c0_i32_1 = arith.constant 0 : i32
    return %c0_i32, %c0_i32_0 : i32, i32
  }
  func.func @transform_5(%arg0: i32, %arg1: i32) -> (i32, i32) {
    %c0_i32 = arith.constant 0 : i32
    %c0_i32_0 = arith.constant 0 : i32
    %c0_i32_1 = arith.constant 0 : i32
    return %c0_i32, %c0_i32_0 : i32, i32
  }
  func.func @transform_6(%arg0: i32, %arg1: i32) -> (i32, i32) {
    %c0_i32 = arith.constant 0 : i32
    %c0_i32_0 = arith.constant 0 : i32
    %c0_i32_1 = arith.constant 0 : i32
    return %c0_i32, %c0_i32_0 : i32, i32
  }
  func.func @transform_7(%arg0: i32, %arg1: i32) -> (i32, i32, i32) {
    %c0_i32 = arith.constant 0 : i32
    %c0_i32_0 = arith.constant 0 : i32
    return %arg0, %arg1, %c0_i32 : i32, i32, i32
  }
}

</mosaic_0001>

<bundles_post_ra>
// kernel: tpu_custom_call.1
= control target key start
LH: loop header
LB: loop body
LE: loop exit
PB: predicated region body
PF: predicated region fallthrough
CT: control target
= control target key end

     0   :  { %s1057_s24 = smov 0   ;;  %s1059_s25 = smov 0   ;;  %s1161_s0 = inlined_call_operand.vmem [shape: f32[2,16,4], index: 0, kind: input, shape index: {}]   ;;  %s1162_s1 = inlined_call_operand.vmem [shape: f32[2,2,2,4], index: 1, kind: input, shape index: {}]   ;;  %s1163_s2 = inlined_call_operand.vmem [shape: f32[3,4,4], index: 2, kind: input, shape index: {}]   ;;  %s1164_s3 = inlined_call_operand.vmem [shape: f32[1,4], index: 3, kind: input, shape index: {}]   ;;  %s1165_s4 = inlined_call_operand.vmem [shape: f32[4,4], index: 4, kind: input, shape index: {}]   ;;  %s1166_s5 = inlined_call_operand.vmem [shape: f32[4,4], index: 5, kind: input, shape index: {}]   ;;  %s1167_s6 = inlined_call_operand.vmem [shape: f32[1,4], index: 6, kind: input, shape index: {}]   ;;  %s1168_s7 = inlined_call_operand.vmem [shape: f32[2,16,4], index: 7, kind: output, shape index: {}]  }
   0x1   :  { %s1061_s26 = smov 0   ;;  %s1063_s27 = smov 0  }
   0x2   :  { %s1065_s28 = smov 0  }
   0x3 LB: > { %s26_s29 = sadd.s32 1, %s1005_s26  ;;  %s29_s30 = sadd.s32 1, %s1009_s27  ;;  %s1013_s28 = sphi %s1065_s28, %s17_s28   ;;  %s1009_s27 = sphi %s1063_s27, %s1172_s27   ;;  %s1005_s26 = sphi %s1061_s26, %s1171_s26   ;;  %s1001_s25 = sphi %s1059_s25, %s1170_s25   ;;  %s997_s24 = sphi %s1057_s24, %s1169_s24  }
   0x4   : > { %p27_p0 = scmp.ge.s32.totalorder %s26_s29, 2  ;;  %p875_p1 = scmp.ge.s32.totalorder %s1013_s28, 1 }
   0x5   : > { %p271_p2 = scmp.lt.s32.totalorder %s1013_s28, 5 }
   0x6   : > { %s1174_s29 = smov (%p27_p0, %s26_s29), 0  ;;  %s1176_s30 = smov (!%p27_p0, %s29_s30), %s1009_s27 }
   0x7   : > { %p272_p3 = pnand %p875_p1, %p271_p2  ;;  %p31_p4 = scmp.ge.s32.totalorder %s1176_s30, 2 }
   0x8   : > { %p317_p5 = scmp.lt.s32.totalorder (!%p272_p3), %s1001_s25, 1  ;;  %p319_p6 = scmp.lt.s32.totalorder (!%p272_p3), %s997_s24, 1 }
   0x9   : > { %s1178_s30 = smov (%p31_p4, %s1176_s30), 0  ;;  %275 = sbr.rel (%p272_p3) target bundleno = 434 (0x1b2), region = 48 }
   0xe   : > { %v882_v0 = vld [vmem:[%s1163_s2 + $0x4] sm:$0xf]  ;;  %vm363_vm0 = vcmask 1043456   ;;  %v1015_v1 = vmov 0.0   ;;  %v356_v2 = vld [vmem:[%s1163_s2] sm:$0xf] }
   0xf   : > { %908 = vmatprep.subr.mxu0 %v1015_v1  ;;  %913 = vmatprep.subr.mxu1 %v1015_v1  ;;  %vm1016_vm1 = vmmov 0   ;;  %s1180_s25 = smov (!%p317_p5, %s1001_s25), 1  ;;  %s1182_s24 = smov (!%p319_p6, %s997_s24), 1  ;;  %vm346_vm2 = vcmask 31744   ;;  %vm353_vm3 = vcmask 25601   ;;  %vm351_vm4 = vcmask 24576  }
  0x10   : > { %909 = vmatpush3.msk.msra.mxu0 %vm363_vm0, %v882_v0  ;;  %910 = vmatprep.mubr.msk.f32.mxu0 %vm1016_vm1, %v1015_v1  ;;  %s876_s12 = sshll.u32 %s1180_s25, 1  ;;  %v887_v9 = vld [vmem:[%s1163_s2 + $0x8] sm:$0xf]  ;;  %v605_v13 = vld [vmem:[%s1166_s5] sm:$0xf] }
  0x11   : > { %914 = vmatpush3.msk.msra.mxu1 %vm363_vm0, %v356_v2  ;;  %915 = vmatprep.mubr.msk.f32.mxu1 %vm1016_vm1, %v1015_v1  ;;  %s1101_s13 = sadd.s32 %s876_s12, %s1182_s24  ;;  %v604_v14 = vld [vmem:[%s1165_s4] sm:$0xf] }
  0x12   : > { %918 = vmatprep.subr.mxu0 %v1015_v1  ;;  %923 = vmatprep.subr.mxu1 %v1015_v1  ;;  %s877_s14 = sshll.u32 %s1101_s13, 3  ;;  %s879_s15 = sshll.u32 %s1101_s13, 1  ;;  %v890_v21 = vld [vmem:[%s1164_s3] ss:$0 sm:$0xff] }
  0x13   : > { %s324_s18 = scalar_lea.vmem %s1161_s0, %s877_s14  ;;  %s332_s21 = scalar_lea.vmem %s1162_s1, %s879_s15  ;;  %v895_v30 = vld [vmem:[%s1167_s6] ss:$0 sm:$0xff] }
  0x14   : > { %v341_v3 = vld [vmem:[%s324_s18] sm:$0xff]  ;;  %s340_s18 = scalar_lea.vmem %s1168_s7, %s877_s14 }
  0x15   : > { %v342_v4 = vld [vmem:[%s332_s21] sm:$0x3]  ;;  %vm343_vm5 = vcmp.gt.f32.partialorder %v341_v3, 0.0  ;;  %v344_v5 = vmul.f32 0.2, %v341_v3 }
  0x16   : > { %vm348_vm6 = vcmp.gt.f32.partialorder %v342_v4, 0.0  ;;  %v349_v6 = vmul.f32 0.2, %v342_v4 }
  0x17   : > { %v345_v7 = vsel %vm343_vm5, %v341_v3, %v344_v5 }
  0x18   : > { %v350_v8 = vsel %vm348_vm6, %v342_v4, %v349_v6  ;;  %347 = vst.msk [vmem:[#allocation2 + $0x1] sm:$0xff] %vm346_vm2, %v345_v7 }
  0x19   : > { %354 = vst.msk [vmem:[#allocation2 + $0x8] sm:$0x2] %vm353_vm3, %v350_v8 }
  0x1a   : > { %352 = vst.msk [vmem:[#allocation2] sm:$0x1] %vm351_vm4, %v350_v8 }
  0x1f   : > { %v357_v10 = vld [vmem:[#allocation2 + $0x1] sm:$0xff] }
  0x20   : > { %911 = vmatmul.mubr.msk.f32.vlgmr.msra.gmra.mxu0 %vm346_vm2, %v357_v10  ;;  %v513_v12 = vld [vmem:[#allocation2 + $0x2] sm:$0xff] }
  0x21   : > { %v355_v11 = vld [vmem:[#allocation2] sm:$0xff]  ;;  %919 = vmatpush3.msk.msra.mxu0 %vm363_vm0, %v887_v9  ;;  %920 = vmatprep.mubr.msk.f32.mxu0 %vm1016_vm1, %v1015_v1 }
  0x22   : > { %916 = vmatmul.mubr.msk.f32.vlgmr.msra.gmra.mxu1 %vm346_vm2, %v355_v11  ;;  %928 = vmatprep.subr.mxu0 %v1015_v1 }
  0x23   : > { %925 = vmatprep.mubr.msk.f32.mxu1 %vm1016_vm1, %v1015_v1  ;;  %924 = vmatpush3.msk.msra.mxu1 %vm363_vm0, %v605_v13 }
  0x24   : > { %921 = vmatmul.mubr.msk.f32.vlgmr.msra.gmra.mxu0 %vm346_vm2, %v513_v12 }
  0x25   : > { %930 = vmatprep.mubr.msk.f32.mxu0 %vm1016_vm1, %v1015_v1  ;;  %929 = vmatpush3.msk.msra.mxu0 %vm363_vm0, %v604_v14 }
  0x26   : > { %926 = vmatmul.mubr.msk.f32.vlgmr.msra.gmra.mxu1 %vm346_vm2, %v341_v3 }
  0xe0   : > { %v433_v15 = vpop.f32.mrf.mxu0 }
  0xe2   : > { %v509_v16 = vpop.f32.mrf.mxu1  ;;  %v912_v17 = vpop.f32.mrf.mxu0 }
  0xe3   : > { %v510_v19 = vadd.f32 %v509_v16, %v433_v15 }
  0xe4   : > { %v917_v18 = vpop.f32.mrf.mxu1  ;;  %v588_v20 = vpop.f32.mrf.mxu0 }
  0xe5   : > { %v592_v22 = vadd.f32 %v588_v20, %v510_v19 }
  0xe6   : > { %v922_v23 = vpop.f32.mrf.mxu0  ;;  %v678_v27 = vpop.f32.mrf.mxu1 }
  0xe7   : > { %v600_v24 = vadd.f32 %v890_v21, %v592_v22 }
  0xe8   : > { %v927_v28 = vpop.f32.mrf.mxu1 }
  0xe9   : > { %vm601_vm7 = vcmp.gt.f32.partialorder %v600_v24, 0.0  ;;  %v602_v25 = vmul.f32 0.2, %v600_v24 }
  0xeb   : > { %v603_v26 = vsel %vm601_vm7, %v600_v24, %v602_v25 }
  0xec   : > { %931 = vmatmul.mubr.msk.f32.vlgmr.msra.gmra.mxu0 %vm346_vm2, %v603_v26 }
 0x1ac   : > { %v754_v29 = vpop.f32.mrf.mxu0 }
 0x1ad   : > { %v755_v31 = vadd.f32 %v754_v29, %v678_v27 }
 0x1ae   : > { %v932_v32 = vpop.f32.mrf.mxu0 }
 0x1af   : > { %v765_v33 = vadd.f32 %v895_v30, %v755_v31 }
 0x1b1   : > { %766 = vst.msk [vmem:[%s340_s18] sm:$0xff] %vm346_vm2, %v765_v33 }
 0x1b2 PF: > { %s17_s28 = sadd.s32 1, %s1013_s28   ;;  %s1169_s24 = smov %s1005_s26 }
 0x1b3   : > { %p14_p7 = scmp.ge.s32.totalorder %s17_s28, 6   ;;  %s1170_s25 = smov %s1009_s27 }
 0x1b4   : > { %s1171_s26 = smov %s1174_s29  ;;  %s1172_s27 = smov %s1178_s30 }
 0x1b5   :  { %16 = sbr.rel (!%p14_p7) target bundleno = 3 (0x3), region = 83 }

// kernel: tpu_custom_call.1
= control target key start
LH: loop header
LB: loop body
LE: loop exit
PB: predicated region body
PF: predicated region fallthrough
CT: control target
= control target key end

     0   :  { %s1057_s24 = smov 0   ;;  %s1059_s25 = smov 0   ;;  %s1161_s0 = inlined_call_operand.vmem [shape: f32[2,16,4], index: 0, kind: input, shape index: {}]   ;;  %s1162_s1 = inlined_call_operand.vmem [shape: f32[2,2,2,4], index: 1, kind: input, shape index: {}]   ;;  %s1163_s2 = inlined_call_operand.vmem [shape: f32[3,4,4], index: 2, kind: input, shape index: {}]   ;;  %s1164_s3 = inlined_call_operand.vmem [shape: f32[1,4], index: 3, kind: input, shape index: {}]   ;;  %s1165_s4 = inlined_call_operand.vmem [shape: f32[4,4], index: 4, kind: input, shape index: {}]   ;;  %s1166_s5 = inlined_call_operand.vmem [shape: f32[4,4], index: 5, kind: input, shape index: {}]   ;;  %s1167_s6 = inlined_call_operand.vmem [shape: f32[1,4], index: 6, kind: input, shape index: {}]   ;;  %s1168_s7 = inlined_call_operand.vmem [shape: f32[2,16,4], index: 7, kind: output, shape index: {}]  }
   0x1   :  { %s1061_s26 = smov 0   ;;  %s1063_s27 = smov 0  }
   0x2   :  { %s1065_s28 = smov 0  }
   0x3 LB: > { %s26_s29 = sadd.s32 1, %s1005_s26  ;;  %s29_s30 = sadd.s32 1, %s1009_s27  ;;  %s1013_s28 = sphi %s1065_s28, %s17_s28   ;;  %s1009_s27 = sphi %s1063_s27, %s1172_s27   ;;  %s1005_s26 = sphi %s1061_s26, %s1171_s26   ;;  %s1001_s25 = sphi %s1059_s25, %s1170_s25   ;;  %s997_s24 = sphi %s1057_s24, %s1169_s24  }
   0x4   : > { %p27_p0 = scmp.ge.s32.totalorder %s26_s29, 2  ;;  %p875_p1 = scmp.ge.s32.totalorder %s1013_s28, 1 }
   0x5   : > { %p271_p2 = scmp.lt.s32.totalorder %s1013_s28, 5 }
   0x6   : > { %s1174_s29 = smov (%p27_p0, %s26_s29), 0  ;;  %s1176_s30 = smov (!%p27_p0, %s29_s30), %s1009_s27 }
   0x7   : > { %p272_p3 = pnand %p875_p1, %p271_p2  ;;  %p31_p4 = scmp.ge.s32.totalorder %s1176_s30, 2 }
   0x8   : > { %p317_p5 = scmp.lt.s32.totalorder (!%p272_p3), %s1001_s25, 1  ;;  %p319_p6 = scmp.lt.s32.totalorder (!%p272_p3), %s997_s24, 1 }
   0x9   : > { %s1178_s30 = smov (%p31_p4, %s1176_s30), 0  ;;  %275 = sbr.rel (%p272_p3) target bundleno = 434 (0x1b2), region = 48 }
   0xe   : > { %v882_v0 = vld [vmem:[%s1163_s2 + $0x4] sm:$0xf]  ;;  %vm363_vm0 = vcmask 1043456   ;;  %v1015_v1 = vmov 0.0   ;;  %v356_v2 = vld [vmem:[%s1163_s2] sm:$0xf] }
   0xf   : > { %908 = vmatprep.subr.mxu0 %v1015_v1  ;;  %913 = vmatprep.subr.mxu1 %v1015_v1  ;;  %vm1016_vm1 = vmmov 0   ;;  %s1180_s25 = smov (!%p317_p5, %s1001_s25), 1  ;;  %s1182_s24 = smov (!%p319_p6, %s997_s24), 1  ;;  %vm346_vm2 = vcmask 31744   ;;  %vm353_vm3 = vcmask 25601   ;;  %vm351_vm4 = vcmask 24576  }
  0x10   : > { %909 = vmatpush3.msk.msra.mxu0 %vm363_vm0, %v882_v0  ;;  %910 = vmatprep.mubr.msk.f32.mxu0 %vm1016_vm1, %v1015_v1  ;;  %s876_s12 = sshll.u32 %s1180_s25, 1  ;;  %v887_v9 = vld [vmem:[%s1163_s2 + $0x8] sm:$0xf]  ;;  %v605_v13 = vld [vmem:[%s1166_s5] sm:$0xf] }
  0x11   : > { %914 = vmatpush3.msk.msra.mxu1 %vm363_vm0, %v356_v2  ;;  %915 = vmatprep.mubr.msk.f32.mxu1 %vm1016_vm1, %v1015_v1  ;;  %s1101_s13 = sadd.s32 %s876_s12, %s1182_s24  ;;  %v604_v14 = vld [vmem:[%s1165_s4] sm:$0xf] }
  0x12   : > { %918 = vmatprep.subr.mxu0 %v1015_v1  ;;  %923 = vmatprep.subr.mxu1 %v1015_v1  ;;  %s877_s14 = sshll.u32 %s1101_s13, 3  ;;  %s879_s15 = sshll.u32 %s1101_s13, 1  ;;  %v890_v21 = vld [vmem:[%s1164_s3] ss:$0 sm:$0xff] }
  0x13   : > { %s324_s18 = scalar_lea.vmem %s1161_s0, %s877_s14  ;;  %s332_s21 = scalar_lea.vmem %s1162_s1, %s879_s15  ;;  %v895_v30 = vld [vmem:[%s1167_s6] ss:$0 sm:$0xff] }
  0x14   : > { %v341_v3 = vld [vmem:[%s324_s18] sm:$0xff]  ;;  %s340_s18 = scalar_lea.vmem %s1168_s7, %s877_s14 }
  0x15   : > { %v342_v4 = vld [vmem:[%s332_s21] sm:$0x3]  ;;  %vm343_vm5 = vcmp.gt.f32.partialorder %v341_v3, 0.0  ;;  %v344_v5 = vmul.f32 0.2, %v341_v3 }
  0x16   : > { %vm348_vm6 = vcmp.gt.f32.partialorder %v342_v4, 0.0  ;;  %v349_v6 = vmul.f32 0.2, %v342_v4 }
  0x17   : > { %v345_v7 = vsel %vm343_vm5, %v341_v3, %v344_v5 }
  0x18   : > { %v350_v8 = vsel %vm348_vm6, %v342_v4, %v349_v6  ;;  %347 = vst.msk [vmem:[#allocation2 + $0x1] sm:$0xff] %vm346_vm2, %v345_v7 }
  0x19   : > { %354 = vst.msk [vmem:[#allocation2 + $0x8] sm:$0x2] %vm353_vm3, %v350_v8 }
  0x1a   : > { %352 = vst.msk [vmem:[#allocation2] sm:$0x1] %vm351_vm4, %v350_v8 }
  0x1f   : > { %v357_v10 = vld [vmem:[#allocation2 + $0x1] sm:$0xff] }
  0x20   : > { %911 = vmatmul.mubr.msk.f32.vlgmr.msra.gmra.mxu0 %vm346_vm2, %v357_v10  ;;  %v513_v12 = vld [vmem:[#allocation2 + $0x2] sm:$0xff] }
  0x21   : > { %v355_v11 = vld [vmem:[#allocation2] sm:$0xff]  ;;  %919 = vmatpush3.msk.msra.mxu0 %vm363_vm0, %v887_v9  ;;  %920 = vmatprep.mubr.msk.f32.mxu0 %vm1016_vm1, %v1015_v1 }
  0x22   : > { %916 = vmatmul.mubr.msk.f32.vlgmr.msra.gmra.mxu1 %vm346_vm2, %v355_v11  ;;  %928 = vmatprep.subr.mxu0 %v1015_v1 }
  0x23   : > { %925 = vmatprep.mubr.msk.f32.mxu1 %vm1016_vm1, %v1015_v1  ;;  %924 = vmatpush3.msk.msra.mxu1 %vm363_vm0, %v605_v13 }
  0x24   : > { %921 = vmatmul.mubr.msk.f32.vlgmr.msra.gmra.mxu0 %vm346_vm2, %v513_v12 }
  0x25   : > { %930 = vmatprep.mubr.msk.f32.mxu0 %vm1016_vm1, %v1015_v1  ;;  %929 = vmatpush3.msk.msra.mxu0 %vm363_vm0, %v604_v14 }
  0x26   : > { %926 = vmatmul.mubr.msk.f32.vlgmr.msra.gmra.mxu1 %vm346_vm2, %v341_v3 }
  0xe0   : > { %v433_v15 = vpop.f32.mrf.mxu0 }
  0xe2   : > { %v509_v16 = vpop.f32.mrf.mxu1  ;;  %v912_v17 = vpop.f32.mrf.mxu0 }
  0xe3   : > { %v510_v19 = vadd.f32 %v509_v16, %v433_v15 }
  0xe4   : > { %v917_v18 = vpop.f32.mrf.mxu1  ;;  %v588_v20 = vpop.f32.mrf.mxu0 }
  0xe5   : > { %v592_v22 = vadd.f32 %v588_v20, %v510_v19 }
  0xe6   : > { %v922_v23 = vpop.f32.mrf.mxu0  ;;  %v678_v27 = vpop.f32.mrf.mxu1 }
  0xe7   : > { %v600_v24 = vadd.f32 %v890_v21, %v592_v22 }
  0xe8   : > { %v927_v28 = vpop.f32.mrf.mxu1 }
  0xe9   : > { %vm601_vm7 = vcmp.gt.f32.partialorder %v600_v24, 0.0  ;;  %v602_v25 = vmul.f32 0.2, %v600_v24 }
  0xeb   : > { %v603_v26 = vsel %vm601_vm7, %v600_v24, %v602_v25 }
  0xec   : > { %931 = vmatmul.mubr.msk.f32.vlgmr.msra.gmra.mxu0 %vm346_vm2, %v603_v26 }
 0x1ac   : > { %v754_v29 = vpop.f32.mrf.mxu0 }
 0x1ad   : > { %v755_v31 = vadd.f32 %v754_v29, %v678_v27 }
 0x1ae   : > { %v932_v32 = vpop.f32.mrf.mxu0 }
 0x1af   : > { %v765_v33 = vadd.f32 %v895_v30, %v755_v31 }
 0x1b1   : > { %766 = vst.msk [vmem:[%s340_s18] sm:$0xff] %vm346_vm2, %v765_v33 }
 0x1b2 PF: > { %s17_s28 = sadd.s32 1, %s1013_s28   ;;  %s1169_s24 = smov %s1005_s26 }
 0x1b3   : > { %p14_p7 = scmp.ge.s32.totalorder %s17_s28, 6   ;;  %s1170_s25 = smov %s1009_s27 }
 0x1b4   : > { %s1171_s26 = smov %s1174_s29  ;;  %s1172_s27 = smov %s1178_s30 }
 0x1b5   :  { %16 = sbr.rel (!%p14_p7) target bundleno = 3 (0x3), region = 83 }

</bundles_post_ra>
